<compile_context>
chip_gen: v7x
topology: tpu7x:2x2x1
jax: 0.10.0
libtpu: 0.0.40
codegen_flags: <defaults>
</compile_context>

<pallas_src>
import math
import functools

import jax
import jax.numpy as jnp
from jax.experimental import pallas as pl
from jax.experimental.pallas import tpu as pltpu


def _dropout_threshold_u32(p: float) -> int:
    """uint32 threshold t such that P(bits >= t) == 1 - p for bits ~ U[0, 2^32)."""
    return min(int(round(p * float(1 << 32))), (1 << 32) - 1)


def _pe_add_kernel(x_ref, pe_ref, o_ref):
    # x_ref: (seq_tile, B, D);  pe_ref: (seq_tile, 1, D) -> broadcast over batch.
    o_ref[...] = x_ref[...] + pe_ref[...]


def _pe_add_dropout_kernel(x_ref, pe_ref, bits_ref, o_ref, *, threshold, scale):
    y = x_ref[...] + pe_ref[...]                       # compute in x.dtype
    keep = bits_ref[...] >= jnp.uint32(threshold)      # integer threshold compare
    o_ref[...] = jnp.where(keep, y * jnp.asarray(scale, y.dtype),
                           jnp.asarray(0, y.dtype))


def make_positional_encoding_table(d_model: int, max_len: int = 5000,
                                   dtype=jnp.float32):
    """Replicates the PyTorch buffer `pe` of shape [max_len, 1, d_model]."""
    position = jnp.arange(max_len, dtype=jnp.float32)[:, None]            # (L, 1)
    div_term = jnp.exp(jnp.arange(0, d_model, 2, dtype=jnp.float32)
                       * (-math.log(10000.0) / d_model))                  # (D/2,)
    pe = jnp.zeros((max_len, 1, d_model), dtype=jnp.float32)
    pe = pe.at[:, 0, 0::2].set(jnp.sin(position * div_term))
    pe = pe.at[:, 0, 1::2].set(jnp.cos(position * div_term))
    return pe.astype(dtype)


def _pick_seq_tile(S, B, D, x_itemsize, with_bits):
    """Largest seq tile whose double-buffered working set stays a few MiB.

    Keeps tiles small enough to be safe on v7x's 64 MiB VMEM while still big
    enough (multi-MiB) to approach the HBM roofline for this streaming kernel.
    """
    row_bytes = B * D * (2 * x_itemsize + (4 if with_bits else 0)) + D * x_itemsize
    target_stage_bytes = 4 * 1024 * 1024        # per pipeline stage; x2 double-buffered
    tile = min(S, max(8, target_stage_bytes // max(row_bytes, 1)))
    if tile >= 8:
        tile -= tile % 8                        # sublane-friendly multiple of 8
    return int(max(1, tile))


@functools.partial(jax.jit, static_argnames=("p", "train", "seq_tile"))
def positional_encoding_forward(x, pe, key, *, p: float = 0.1,
                                train: bool = True, seq_tile=None):
    """x: [S, B, D]; pe: [max_len, 1, D]; key: jax.random key for dropout."""
    S, B, D = x.shape
    pe_s = pe[:S].astype(x.dtype)               # glue: pe[:x.size(0)], in x.dtype
    use_dropout = bool(train) and p > 0.0

    if seq_tile is None:
        seq_tile = _pick_seq_tile(S, B, D, x.dtype.itemsize, use_dropout)
    seq_tile = int(min(int(seq_tile), S))
    grid = (pl.cdiv(S, seq_tile),)

    x_spec = pl.BlockSpec((seq_tile, B, D), lambda i: (i, 0, 0))
    pe_spec = pl.BlockSpec((seq_tile, 1, D), lambda i: (i, 0, 0))
    bits_spec = pl.BlockSpec((seq_tile, B, D), lambda i: (i, 0, 0))
    out_spec = pl.BlockSpec((seq_tile, B, D), lambda i: (i, 0, 0))

    # VMEM budget: every streamed operand double-buffered, plus margin.  Capped
    # well below the 64 MiB physical VMEM of v7x (128 MiB on v5e/v6e).
    stage_bytes = (seq_tile * B * D * (2 * x.dtype.itemsize
                                       + (4 if use_dropout else 0))
                   + seq_tile * D * x.dtype.itemsize)
    vmem_limit = int(min(max(4 * stage_bytes, 16 * 1024 * 1024), 48 * 1024 * 1024))

    cost = pl.CostEstimate(
        flops=3 * S * B * D,
        transcendentals=0,
        bytes_accessed=(2 * x.size * x.dtype.itemsize
                        + pe_s.size * pe_s.dtype.itemsize
                        + (4 * x.size if use_dropout else 0)))

    compiler_params = pltpu.CompilerParams(
        dimension_semantics=("parallel",),      # tiles independent -> both v7x TCs
        vmem_limit_bytes=vmem_limit)

    if not use_dropout:
        return pl.pallas_call(
            _pe_add_kernel,
            out_shape=jax.ShapeDtypeStruct((S, B, D), x.dtype),
            grid=grid,
            in_specs=[x_spec, pe_spec],
            out_specs=out_spec,
            compiler_params=compiler_params,
            cost_estimate=cost,
        )(x, pe_s)

    # TODO(synk): on real TPU hardware, pltpu.prng_seed/prng_random_bits would let
    # the dropout mask be drawn in-kernel (saving one HBM stream), but those
    # primitives do not lower under CPU/interpret mode, so the bits are generated
    # with jax.random and streamed through the same BlockSpec pipeline instead.
    bits = jax.random.bits(key, x.shape, dtype=jnp.uint32)
    threshold = _dropout_threshold_u32(p)
    scale = 1.0 / (1.0 - p)
    kernel = functools.partial(_pe_add_dropout_kernel,
                               threshold=threshold, scale=scale)
    return pl.pallas_call(
        kernel,
        out_shape=jax.ShapeDtypeStruct((S, B, D), x.dtype),
        grid=grid,
        in_specs=[x_spec, pe_spec, bits_spec],
        out_specs=out_spec,
        compiler_params=compiler_params,
        cost_estimate=cost,
    )(x, pe_s, bits)


if __name__ == "__main__":
    SEQ, BATCH, D_MODEL = 8, 2, 32
    P_DROP = 0.1

    root = jax.random.PRNGKey(0)
    key_x, key_drop = jax.random.split(root)
    x = jax.random.normal(key_x, (SEQ, BATCH, D_MODEL), dtype=jnp.float32)
    pe = make_positional_encoding_table(D_MODEL, max_len=5000)

    # Eval mode (dropout disabled) — exact check against a pure-JAX reference.
    out_eval = positional_encoding_forward(x, pe, key_drop, p=P_DROP, train=False)
    jax.block_until_ready(out_eval)
    ref_eval = x + pe[:SEQ]
    assert out_eval.shape == (SEQ, BATCH, D_MODEL)
    assert jnp.allclose(out_eval, ref_eval, atol=1e-6), "eval-mode mismatch"

    # Train mode (inverted dropout) — rebuild the reference from the same bits.
    out_train = positional_encoding_forward(x, pe, key_drop, p=P_DROP, train=True)
    jax.block_until_ready(out_train)
    bits = jax.random.bits(key_drop, x.shape, dtype=jnp.uint32)
    thr = _dropout_threshold_u32(P_DROP)
    ref_train = jnp.where(bits >= jnp.uint32(thr),
                          ref_eval * jnp.float32(1.0 / (1.0 - P_DROP)),
                          jnp.float32(0.0))
    assert out_train.shape == (SEQ, BATCH, D_MODEL)
    assert jnp.allclose(out_train, ref_train, atol=1e-5), "train-mode mismatch"

    print("KERNEL_OK")
</pallas_src>

<mosaic_0001>
module attributes {stable_mosaic.version = 11 : i64} {
  func.func @_pe_add_kernel(%arg0: i32, %arg1: memref<8x2x32xf32, #tpu.memory_space<vmem>>, %arg2: memref<8x1x32xf32, #tpu.memory_space<vmem>>, %arg3: memref<8x2x32xf32, #tpu.memory_space<vmem>>) attributes {dimension_semantics = [#tpu.dimension_semantics<parallel>], iteration_bounds = array<i64: 1>, scalar_prefetch = 0 : i64, scratch_operands = 0 : i64, tpu.core_type = #tpu.core_type<tc>, window_params = [{transform_indices = @transform_0, window_bounds = array<i64: 8, 2, 32>}, {transform_indices = @transform_1, window_bounds = array<i64: 8, 1, 32>}, {transform_indices = @transform_2, window_bounds = array<i64: 8, 2, 32>}]} {
    %c0 = arith.constant 0 : index
    %c0_0 = arith.constant 0 : index
    %c0_1 = arith.constant 0 : index
    %0 = vector.load %arg1[%c0, %c0_0, %c0_1] : memref<8x2x32xf32, #tpu.memory_space<vmem>>, vector<8x2x32xf32>
    %c0_2 = arith.constant 0 : index
    %c0_3 = arith.constant 0 : index
    %c0_4 = arith.constant 0 : index
    %1 = vector.load %arg2[%c0_2, %c0_3, %c0_4] : memref<8x1x32xf32, #tpu.memory_space<vmem>>, vector<8x1x32xf32>
    %2 = vector.broadcast %1 : vector<8x1x32xf32> to vector<8x2x32xf32>
    %3 = arith.addf %0, %2 : vector<8x2x32xf32>
    %c0_5 = arith.constant 0 : index
    %c0_6 = arith.constant 0 : index
    %c0_7 = arith.constant 0 : index
    %4 = vector.load %arg3[%c0_5, %c0_6, %c0_7] : memref<8x2x32xf32, #tpu.memory_space<vmem>>, vector<8x2x32xf32>
    tpu.vector_store %arg3[%c0_5, %c0_6, %c0_7], %3 {strides = array<i32>} : memref<8x2x32xf32, #tpu.memory_space<vmem>>, vector<8x2x32xf32>,
    return
  }
  func.func @transform_0(%arg0: i32) -> (i32, i32, i32) {
    %c0_i32 = arith.constant 0 : i32
    %c0_i32_0 = arith.constant 0 : i32
    %c0_i32_1 = arith.constant 0 : i32
    return %arg0, %c0_i32, %c0_i32_0 : i32, i32, i32
  }
  func.func @transform_1(%arg0: i32) -> (i32, i32, i32) {
    %c0_i32 = arith.constant 0 : i32
    %c0_i32_0 = arith.constant 0 : i32
    %c0_i32_1 = arith.constant 0 : i32
    return %arg0, %c0_i32, %c0_i32_0 : i32, i32, i32
  }
  func.func @transform_2(%arg0: i32) -> (i32, i32, i32) {
    %c0_i32 = arith.constant 0 : i32
    %c0_i32_0 = arith.constant 0 : i32
    %c0_i32_1 = arith.constant 0 : i32
    return %arg0, %c0_i32, %c0_i32_0 : i32, i32, i32
  }
}

</mosaic_0001>

<bundles_post_ra>
// kernel: positional_encoding_forward.1
= control target key start
LH: loop header
LB: loop body
LE: loop exit
PB: predicated region body
PF: predicated region fallthrough
CT: control target
= control target key end

     0   :  { %vm84_vm0 = vcmask 254976   ;;  %s230_s0 = inlined_call_operand.vmem [shape: f32[8,2,32], index: 0, kind: input, shape index: {}]   ;;  %s231_s1 = inlined_call_operand.vmem [shape: f32[8,1,32], index: 1, kind: input, shape index: {}]   ;;  %s232_s2 = inlined_call_operand.hbm [shape: f32[8,2,32], index: 2, kind: output, shape index: {}]  }
   0x1   :  { %v12_v0 = vld [vmem:[%s230_s0] sm:$0x3]  ;;  %v13_v3 = vld [vmem:[%s230_s0 + $0x2] sm:$0x3]  ;;  %v14_v5 = vld [vmem:[%s230_s0 + $0x4] sm:$0x3] }
   0x2   :  { %v109_v1 = vld [vmem:[%s231_s1] ss:$0 sm:$0xff]  ;;  %v110_v4 = vld [vmem:[%s231_s1 + $0x1] ss:$0 sm:$0xff]  ;;  %v111_v7 = vld [vmem:[%s231_s1 + $0x2] ss:$0 sm:$0xff] }
   0x3   :  { %v76_v2 = vadd.f32 %v109_v1, %v12_v0  ;;  %v77_v6 = vadd.f32 %v110_v4, %v13_v3  ;;  %v15_v8 = vld [vmem:[%s230_s0 + $0x6] sm:$0x3]  ;;  %v112_v9 = vld [vmem:[%s231_s1 + $0x3] ss:$0 sm:$0xff]  ;;  %v78_v10 = vadd.f32 %v111_v7, %v14_v5  ;;  %v16_v12 = vld [vmem:[%s230_s0 + $0x8] sm:$0x3] }
   0x4   :  { %v79_v11 = vadd.f32 %v112_v9, %v15_v8  ;;  %v113_v13 = vld [vmem:[%s231_s1 + $0x4] ss:$0 sm:$0xff]  ;;  %v17_v14 = vld [vmem:[%s230_s0 + $0xa] sm:$0x3]  ;;  %v114_v16 = vld [vmem:[%s231_s1 + $0x5] ss:$0 sm:$0xff] }
   0x5   :  { %85 = vst.msk [vmem:[#allocation2] sm:$0x3] %vm84_vm0, %v76_v2  ;;  %86 = vst.msk [vmem:[#allocation2 + $0x2] sm:$0x3] %vm84_vm0, %v77_v6  ;;  %v80_v15 = vadd.f32 %v113_v13, %v16_v12  ;;  %v18_v17 = vld [vmem:[%s230_s0 + $0xc] sm:$0x3]  ;;  %v81_v19 = vadd.f32 %v114_v16, %v17_v14 }
   0x6   :  { %v115_v18 = vld [vmem:[%s231_s1 + $0x6] ss:$0 sm:$0xff]  ;;  %87 = vst.msk [vmem:[#allocation2 + $0x4] sm:$0x3] %vm84_vm0, %v78_v10  ;;  %88 = vst.msk [vmem:[#allocation2 + $0x6] sm:$0x3] %vm84_vm0, %v79_v11 }
   0x7   :  { %v82_v20 = vadd.f32 %v115_v18, %v18_v17  ;;  %v19_v21 = vld [vmem:[%s230_s0 + $0xe] sm:$0x3]  ;;  %v116_v22 = vld [vmem:[%s231_s1 + $0x7] ss:$0 sm:$0xff] }
   0x8   :  { %7 = vsyncpa [#allocation3], 0  ;;  %89 = vst.msk [vmem:[#allocation2 + $0x8] sm:$0x3] %vm84_vm0, %v80_v15  ;;  %v83_v23 = vadd.f32 %v116_v22, %v19_v21  ;;  %s144_s13 = smov [#allocation2]  }
   0x9   :  { %s98_s14 = sshll.u32 %s144_s13, 4  ;;  %90 = vst.msk [vmem:[#allocation2 + $0xa] sm:$0x3] %vm84_vm0, %v81_v19  ;;  %91 = vst.msk [vmem:[#allocation2 + $0xc] sm:$0x3] %vm84_vm0, %v82_v20  ;;  %s99_s14 = int_to_ptr.vmem [resolvable:$true] %s98_s14 }
   0xa   :  { %92 = vst.msk [vmem:[#allocation2 + $0xe] sm:$0x3] %vm84_vm0, %v83_v23  ;;  %s120_s15 = scalar_lea.vmem %s99_s14, 256  ;;  %p125_p1 = scmp.lt.s32.totalorder %s99_s14, %s99_s14 }
   0xb   :  { %p121_p0 = scmp.ne.s32.totalorder %s99_s14, %s120_s15  ;;  %p126_p2 = scmp.lt.s32.totalorder %s120_s15, %s120_s15 }
   0xd   :  { %p127_p3 = por %p126_p2, %p125_p1 }
   0xf   :  { %p128_p4 = pnand %p127_p3, %p121_p0 }
  0x11   :  { %131 = shalt.err (!%p128_p4)
}
  0x12   :  { %s132_s16 = scalar_lea.hbm %s232_s2, 256 }
  0x13   :  { %p133_p5 = scmp.ne.s32.totalorder %s232_s2, %s132_s16  ;;  %p136_p6 = scmp.lt.u32.totalorder %s132_s16, %s232_s2 }
  0x15   :  { %p138_p7 = pnand %p136_p6, %p133_p5 }
  0x17   :  { %141 = shalt.err (!%p138_p7)
}
  0x18   :  { %s145_s21 = smov 32   ;;  %s146_s22 = smov 2  }
  0x19   :  { %104 = dma.vmem_to_hbm [thread:$0]  %s99_s14, 256, %s232_s2, [#allocation3], %s145_s21, %s145_s21, %s146_s22  }
  0x1a   :  { %142 = dma.done.wait [#allocation3], 256  }
  0x1b   :  { %143 = vsyncadd [#allocation3], 4294967040 }
  0x1c   :  { %108 = vsyncpa [#allocation3], 1 }

</bundles_post_ra>
